<compile_context>
chip_gen: v5e
topology: v5e:2x2
jax: 0.10.0
libtpu: 0.0.40
codegen_flags: <defaults>
</compile_context>

<pallas_src>
import jax
import jax.numpy as jnp
from jax.experimental import pallas as pl
from jax.experimental.pallas import tpu as pltpu

# ---- small synthetic sizes ----
N, T = 2, 4              # videos, temporal segments -> NT = 8 frames
C, H, W = 8, 16, 16      # channels, spatial
NT = N * T
L = C * H * W            # 2048 lanes per frame (lane-dense layout)
HO, WO = H // 2, W // 2  # MaxPool2d(3, stride=2, padding=1): 16 -> 8
NUM_CLASSES = 10
FEAT = C * HO * WO       # 512 (matches ResNet fc in-features)
KPAD = 128               # classes padded to a full lane tile (lane-dense stores)
FOLD = max(C // 8, 1)    # TSM fold (1/8 of channels)
FOLD_L = FOLD * H * W    # 256 lanes per channel group (multiple of 128)

NEG = -3.0e38            # python float literal mask fill (not a traced constant)


# ----------------------------------------------------------------------------
# Fused kernel: TSM shift + TDM + MaxPool2d(3,2,1) + flatten + fc
# ----------------------------------------------------------------------------
def tsm_tdm_fused_kernel(x_ref, w_ref, b_ref, nt0_ref, ntl_ref, pm_ref, o_ref):
    # x_ref  : (NT, L)    f32  rows ordered n*T + t, lane = (c*H + h)*W + w
    # w_ref  : (L, KPAD)  bf16 fc weight with the stride-2 pool down-sample folded in
    # b_ref  : (1, KPAD)  f32
    # nt0_ref: (NT, 1)    f32  1.0 where t != 0     else 0.0
    # ntl_ref: (NT, 1)    f32  1.0 where t != T - 1 else 0.0
    # pm_ref : (4, L)     f32  additive pooling edge masks (0 valid / NEG on edge)
    #                          rows = [w==0, w==W-1, h==0, h==H-1]
    # o_ref  : (NT, KPAD) f32
    x = x_ref[...]                         # (8, 2048), dense sublanes + lanes
    not_t0 = nt0_ref[...]                  # (8, 1): broadcasts along lanes
    not_tlast = ntl_ref[...]               # (8, 1)

    # ---- TSM: temporal channel shift (zero fill at clip edges) ----
    # rows are (n*T + t): the "next/prev frame of the same video" is a sublane
    # roll by -/+1 with the t==T-1 / t==0 rows forced to zero by the row masks.
    g0 = not_tlast * jnp.roll(x[:, :FOLD_L], -1, axis=0)            # x[t+1]
    g1 = not_t0 * jnp.roll(x[:, FOLD_L:2 * FOLD_L], 1, axis=0)      # x[t-1]
    xs = jnp.concatenate([g0, g1, x[:, 2 * FOLD_L:]], axis=-1)      # lane-aligned

    # ---- TDM: y_t = x_t + (x_t - x_{t-1}), prev == self at t == 0 ----
    diff = xs - jnp.roll(xs, 1, axis=0)
    y = xs + not_t0 * diff                                          # (8, 2048)

    # ---- MaxPool2d(k=3, s=2, p=1): separable shift-and-max on the flat lanes.
    # pltpu.roll is the XLU lane rotation (free co-issue slot); rotated-in garbage
    # only lands on lanes carrying the NEG additive edge mask.
    wm1 = pltpu.roll(y, 1, axis=1) + pm_ref[0:1, :]        # w-1 neighbour
    wp1 = pltpu.roll(y, L - 1, axis=1) + pm_ref[1:2, :]    # w+1 neighbour
    m1 = jnp.maximum(jnp.maximum(wm1, y), wp1)

    hm1 = pltpu.roll(m1, W, axis=1) + pm_ref[2:3, :]       # h-1 neighbour
    hp1 = pltpu.roll(m1, L - W, axis=1) + pm_ref[3:4, :]   # h+1 neighbour
    m2 = jnp.maximum(jnp.maximum(hm1, m1), hp1)            # full-res 3x3 window max

    # ---- flatten + fc: the stride-2 selection is folded into w_ref, so one
    #      lane-dense (8, 2048) x (2048, 128) MXU matmul finishes the forward.
    logits = jnp.dot(m2.astype(jnp.bfloat16), w_ref[...],
                     preferred_element_type=jnp.float32)
    o_ref[...] = logits + b_ref[...]


# ----------------------------------------------------------------------------
# One-time constants (hoisted out of the per-call path)
# ----------------------------------------------------------------------------
def make_constants(fc_w, fc_b):
    # fc weight with the stride-2 pool down-sample folded in: pooled feature
    # (c, i, j) lives at full-resolution lane (c, 2i, 2j) of the 3x3-max map;
    # scatter the fc rows there (zeros elsewhere contribute exactly 0).
    w4 = fc_w.reshape(C, HO, WO, NUM_CLASSES)
    w_exp = jnp.zeros((C, H, W, NUM_CLASSES), fc_w.dtype)
    w_exp = w_exp.at[:, ::2, ::2, :].set(w4)
    w_exp = w_exp.reshape(L, NUM_CLASSES)
    w_exp = jnp.pad(w_exp, ((0, 0), (0, KPAD - NUM_CLASSES))).astype(jnp.bfloat16)

    b_pad = jnp.pad(fc_b, (0, KPAD - NUM_CLASSES)).reshape(1, KPAD).astype(jnp.float32)

    # per-row temporal masks (rows ordered n*T + t)
    t_idx = jnp.arange(NT, dtype=jnp.int32) % T
    not_t0 = (t_idx != 0).astype(jnp.float32).reshape(NT, 1)
    not_tlast = (t_idx != T - 1).astype(jnp.float32).reshape(NT, 1)

    # additive pooling edge masks over the flat lane layout
    lane = jnp.arange(L, dtype=jnp.int32)
    wq = lane % W
    hq = (lane // W) % H
    pool_mask = jnp.stack([
        jnp.where(wq == 0, NEG, 0.0),
        jnp.where(wq == W - 1, NEG, 0.0),
        jnp.where(hq == 0, NEG, 0.0),
        jnp.where(hq == H - 1, NEG, 0.0),
    ]).astype(jnp.float32)                                   # (4, L)

    return w_exp, b_pad, not_t0, not_tlast, pool_mask


# ----------------------------------------------------------------------------
# Wrapper
# ----------------------------------------------------------------------------
@jax.jit
def tsm_tdm_forward(x, w_exp, b_pad, not_t0, not_tlast, pool_mask):
    # x: (N*T, C, H, W) f32 -> FREE reshape to lane-dense (NT, L); rows keep
    # their (n*T + t) order so no transposes are needed on either side.
    x2 = x.reshape(NT, L)

    vmem = pl.BlockSpec(memory_space=pltpu.MemorySpace.VMEM)
    out_pad = pl.pallas_call(
        tsm_tdm_fused_kernel,
        out_shape=jax.ShapeDtypeStruct((NT, KPAD), jnp.float32),
        in_specs=[vmem, vmem, vmem, vmem, vmem, vmem],
        out_specs=vmem,
        cost_estimate=pl.CostEstimate(
            flops=2 * NT * L * KPAD + 24 * NT * L,
            transcendentals=0,
            bytes_accessed=(NT * L * 4 + L * KPAD * 2 + KPAD * 4
                            + 2 * NT * 4 + 4 * L * 4 + NT * KPAD * 4)),
    )(x2, w_exp, b_pad, not_t0, not_tlast, pool_mask)

    # rows are already in (n*T + t) frame order; just drop the class padding
    return out_pad[:, :NUM_CLASSES]


# ----------------------------------------------------------------------------
# Pure-JAX reference for the correctness check
# ----------------------------------------------------------------------------
def _tsm_shift_ref(x, n_videos, n_segments, fold_div=8):
    nt, c, h, w = x.shape
    fold = max(c // fold_div, 1)
    x5 = x.reshape(n_videos, n_segments, c, h, w)
    out = jnp.zeros_like(x5)
    out = out.at[:, :-1, :fold].set(x5[:, 1:, :fold])                  # shift left
    out = out.at[:, 1:, fold:2 * fold].set(x5[:, :-1, fold:2 * fold])  # shift right
    out = out.at[:, :, 2 * fold:].set(x5[:, :, 2 * fold:])             # no shift
    return out.reshape(nt, c, h, w)


def reference_forward(x, fc_w, fc_b):
    xs = _tsm_shift_ref(x, N, T)
    x5 = xs.reshape(N, T, C, H, W)
    prev = jnp.concatenate([x5[:, :1], x5[:, :-1]], axis=1)
    y = (2.0 * x5 - prev).reshape(N * T, C, H, W)
    pooled = jax.lax.reduce_window(
        y, -jnp.inf, jax.lax.max,
        window_dimensions=(1, 1, 3, 3), window_strides=(1, 1, 2, 2),
        padding=((0, 0), (0, 0), (1, 1), (1, 1)))
    flat = pooled.reshape(N * T, -1)
    return jnp.dot(flat, fc_w, precision=jax.lax.Precision.HIGHEST) + fc_b


if __name__ == "__main__":
    key = jax.random.PRNGKey(0)
    kx, kw = jax.random.split(key)

    x = jax.random.normal(kx, (N * T, C, H, W), dtype=jnp.float32)
    # deterministic synthetic fc parameters (ResNet fc: Linear(512, num_classes))
    fc_w = jax.random.normal(kw, (FEAT, NUM_CLASSES), dtype=jnp.float32) * 0.05
    fc_b = 0.1 * jnp.arange(NUM_CLASSES, dtype=jnp.float32)

    consts = make_constants(fc_w, fc_b)   # computed once at init, reused per call
    out = jax.block_until_ready(tsm_tdm_forward(x, *consts))
    ref = reference_forward(x, fc_w, fc_b)

    assert out.shape == (N * T, NUM_CLASSES), out.shape
    err = float(jnp.max(jnp.abs(out - ref)))
    assert jnp.allclose(out, ref, rtol=5e-2, atol=5e-2), f"max abs diff {err}"
    print("KERNEL_OK")
</pallas_src>

<mosaic_0001>
module attributes {stable_mosaic.version = 11 : i64} {
  func.func @tsm_tdm_fused_kernel(%arg0: memref<8x2048xf32, #tpu.memory_space<vmem>>, %arg1: memref<2048x128xbf16, #tpu.memory_space<vmem>>, %arg2: memref<1x128xf32, #tpu.memory_space<vmem>>, %arg3: memref<8x1xf32, #tpu.memory_space<vmem>>, %arg4: memref<8x1xf32, #tpu.memory_space<vmem>>, %arg5: memref<4x2048xf32, #tpu.memory_space<vmem>>, %arg6: memref<8x128xf32, #tpu.memory_space<vmem>>) attributes {dimension_semantics = [], scalar_prefetch = 0 : i64, scratch_operands = 0 : i64, tpu.core_type = #tpu.core_type<tc>} {
    %c0 = arith.constant 0 : index
    %c0_0 = arith.constant 0 : index
    %0 = vector.load %arg0[%c0, %c0_0] : memref<8x2048xf32, #tpu.memory_space<vmem>>, vector<8x2048xf32>
    %c0_1 = arith.constant 0 : index
    %c0_2 = arith.constant 0 : index
    %1 = vector.load %arg3[%c0_1, %c0_2] : memref<8x1xf32, #tpu.memory_space<vmem>>, vector<8x1xf32>
    %c0_3 = arith.constant 0 : index
    %c0_4 = arith.constant 0 : index
    %2 = vector.load %arg4[%c0_3, %c0_4] : memref<8x1xf32, #tpu.memory_space<vmem>>, vector<8x1xf32>
    %3 = vector.extract_strided_slice %0 {offsets = [0, 0], sizes = [8, 256], strides = [1, 1]} : vector<8x2048xf32> to vector<8x256xf32>
    %4 = vector.extract_strided_slice %3 {offsets = [1, 0], sizes = [7, 256], strides = [1, 1]} : vector<8x256xf32> to vector<7x256xf32>
    %5 = vector.extract_strided_slice %3 {offsets = [0, 0], sizes = [1, 256], strides = [1, 1]} : vector<8x256xf32> to vector<1x256xf32>
    %6 = tpu.concatenate %4, %5 in 0 : vector<7x256xf32>, vector<1x256xf32> -> vector<8x256xf32>
    %7 = vector.broadcast %2 : vector<8x1xf32> to vector<8x256xf32>
    %8 = arith.mulf %7, %6 : vector<8x256xf32>
    %9 = vector.extract_strided_slice %0 {offsets = [0, 256], sizes = [8, 256], strides = [1, 1]} : vector<8x2048xf32> to vector<8x256xf32>
    %10 = vector.extract_strided_slice %9 {offsets = [7, 0], sizes = [1, 256], strides = [1, 1]} : vector<8x256xf32> to vector<1x256xf32>
    %11 = vector.extract_strided_slice %9 {offsets = [0, 0], sizes = [7, 256], strides = [1, 1]} : vector<8x256xf32> to vector<7x256xf32>
    %12 = tpu.concatenate %10, %11 in 0 : vector<1x256xf32>, vector<7x256xf32> -> vector<8x256xf32>
    %13 = vector.broadcast %1 : vector<8x1xf32> to vector<8x256xf32>
    %14 = arith.mulf %13, %12 : vector<8x256xf32>
    %15 = vector.extract_strided_slice %0 {offsets = [0, 512], sizes = [8, 1536], strides = [1, 1]} : vector<8x2048xf32> to vector<8x1536xf32>
    %16 = tpu.concatenate %8, %14, %15 in 1 : vector<8x256xf32>, vector<8x256xf32>, vector<8x1536xf32> -> vector<8x2048xf32>
    %17 = vector.extract_strided_slice %16 {offsets = [7, 0], sizes = [1, 2048], strides = [1, 1]} : vector<8x2048xf32> to vector<1x2048xf32>
    %18 = vector.extract_strided_slice %16 {offsets = [0, 0], sizes = [7, 2048], strides = [1, 1]} : vector<8x2048xf32> to vector<7x2048xf32>
    %19 = tpu.concatenate %17, %18 in 0 : vector<1x2048xf32>, vector<7x2048xf32> -> vector<8x2048xf32>
    %20 = arith.subf %16, %19 : vector<8x2048xf32>
    %21 = vector.broadcast %1 : vector<8x1xf32> to vector<8x2048xf32>
    %22 = arith.mulf %21, %20 : vector<8x2048xf32>
    %23 = arith.addf %16, %22 : vector<8x2048xf32>
    %c1_i32 = arith.constant 1 : i32
    %24 = tpu.dynamic_rotate %23 by %c1_i32 dim 1 : vector<8x2048xf32>, i32 -> vector<8x2048xf32>
    %c0_5 = arith.constant 0 : index
    %c0_6 = arith.constant 0 : index
    %25 = vector.load %arg5[%c0_5, %c0_6] : memref<4x2048xf32, #tpu.memory_space<vmem>>, vector<1x2048xf32>
    %26 = vector.broadcast %25 : vector<1x2048xf32> to vector<8x2048xf32>
    %27 = arith.addf %24, %26 : vector<8x2048xf32>
    %c2047_i32 = arith.constant 2047 : i32
    %28 = tpu.dynamic_rotate %23 by %c2047_i32 dim 1 : vector<8x2048xf32>, i32 -> vector<8x2048xf32>
    %c1 = arith.constant 1 : index
    %c0_7 = arith.constant 0 : index
    %29 = vector.load %arg5[%c1, %c0_7] : memref<4x2048xf32, #tpu.memory_space<vmem>>, vector<1x2048xf32>
    %30 = vector.broadcast %29 : vector<1x2048xf32> to vector<8x2048xf32>
    %31 = arith.addf %28, %30 : vector<8x2048xf32>
    %32 = arith.maximumf %27, %23 : vector<8x2048xf32>
    %33 = arith.maximumf %32, %31 : vector<8x2048xf32>
    %c16_i32 = arith.constant 16 : i32
    %34 = tpu.dynamic_rotate %33 by %c16_i32 dim 1 : vector<8x2048xf32>, i32 -> vector<8x2048xf32>
    %c2 = arith.constant 2 : index
    %c0_8 = arith.constant 0 : index
    %35 = vector.load %arg5[%c2, %c0_8] : memref<4x2048xf32, #tpu.memory_space<vmem>>, vector<1x2048xf32>
    %36 = vector.broadcast %35 : vector<1x2048xf32> to vector<8x2048xf32>
    %37 = arith.addf %34, %36 : vector<8x2048xf32>
    %c2032_i32 = arith.constant 2032 : i32
    %38 = tpu.dynamic_rotate %33 by %c2032_i32 dim 1 : vector<8x2048xf32>, i32 -> vector<8x2048xf32>
    %c3 = arith.constant 3 : index
    %c0_9 = arith.constant 0 : index
    %39 = vector.load %arg5[%c3, %c0_9] : memref<4x2048xf32, #tpu.memory_space<vmem>>, vector<1x2048xf32>
    %40 = vector.broadcast %39 : vector<1x2048xf32> to vector<8x2048xf32>
    %41 = arith.addf %38, %40 : vector<8x2048xf32>
    %42 = arith.maximumf %37, %33 : vector<8x2048xf32>
    %43 = arith.maximumf %42, %41 : vector<8x2048xf32>
    %44 = arith.truncf %43 : vector<8x2048xf32> to vector<8x2048xbf16>
    %c0_10 = arith.constant 0 : index
    %c0_11 = arith.constant 0 : index
    %45 = vector.load %arg1[%c0_10, %c0_11] : memref<2048x128xbf16, #tpu.memory_space<vmem>>, vector<2048x128xbf16>
    %cst = arith.constant dense<0.000000e+00> : vector<8x128xf32>
    %46 = tpu.matmul %44, %45, %cst {dimension_numbers = #tpu.dot_dimension_numbers<[1], [0], [0], [1], [0, 0, 1, 1], [], []>} : vector<8x2048xbf16>, vector<2048x128xbf16>, vector<8x128xf32> -> vector<8x128xf32>
    %c0_12 = arith.constant 0 : index
    %c0_13 = arith.constant 0 : index
    %47 = vector.load %arg2[%c0_12, %c0_13] : memref<1x128xf32, #tpu.memory_space<vmem>>, vector<1x128xf32>
    %48 = vector.broadcast %47 : vector<1x128xf32> to vector<8x128xf32>
    %49 = arith.addf %46, %48 : vector<8x128xf32>
    %c0_14 = arith.constant 0 : index
    %c0_15 = arith.constant 0 : index
    %50 = vector.load %arg6[%c0_14, %c0_15] : memref<8x128xf32, #tpu.memory_space<vmem>>, vector<8x128xf32>
    tpu.vector_store %arg6[%c0_14, %c0_15], %49 {strides = array<i32>} : memref<8x128xf32, #tpu.memory_space<vmem>>, vector<8x128xf32>,
    return
  }
}

</mosaic_0001>

<bundles_post_ra>
// kernel: tsm_tdm_forward.1
= control target key start
LH: loop header
LB: loop body
LE: loop exit
PB: predicated region body
PF: predicated region fallthrough
CT: control target
= control target key end

     0   :  { %v2613_v1 = vmov 0   ;;  %s3686_s0 = inlined_call_operand.vmem [shape: f32[8,2048], index: 0, kind: input, shape index: {}]   ;;  %s3687_s1 = inlined_call_operand.vmem [shape: bf16[2048,128], index: 1, kind: input, shape index: {}]   ;;  %s3688_s2 = inlined_call_operand.vmem [shape: f32[1,128], index: 2, kind: input, shape index: {}]   ;;  %s3689_s3 = inlined_call_operand.vmem [shape: f32[8,1], index: 3, kind: input, shape index: {}]   ;;  %s3690_s4 = inlined_call_operand.vmem [shape: f32[8,1], index: 4, kind: input, shape index: {}]   ;;  %s3691_s5 = inlined_call_operand.vmem [shape: f32[4,2048], index: 5, kind: input, shape index: {}]   ;;  %s3692_s6 = inlined_call_operand.hbm [shape: f32[8,128], index: 6, kind: output, shape index: {}]  }
   0x1   :  { %v41_v0 = vld [vmem:[%s3690_s4] sm:$0xff]  ;;  %2585 = vset.pattern.permute.xlu0 %v2613_v1 }
   0x2   :  { %11 = vsyncpa [#allocation3], 0  ;;  %53 = vperm.xlu0 %2585, %v41_v0   ;;  %v40_v2 = vld [vmem:[%s3689_s3] sm:$0xff]  ;;  %v38_v3 = vld [vmem:[%s3686_s0 + $0x70] sm:$0xff]  ;;  %s2614_s9 = smov 1   ;;  %s2615_s10 = smov 127  }
   0x3   :  { %v28_v4 = vld [vmem:[%s3686_s0 + $0x20] sm:$0xff]  ;;  %v104_v6 = vrot.slane %v38_v3, 7  ;;  %v30_v8 = vld [vmem:[%s3686_s0 + $0x30] sm:$0xff]  ;;  %v29_v9 = vld [vmem:[%s3686_s0 + $0x28] sm:$0xff]  ;;  %s2617_s15 = smov 112  }
   0x4   :  { %v94_v7 = vrot.slane %v28_v4, 7  ;;  %v39_v12 = vld [vmem:[%s3686_s0 + $0x78] sm:$0xff]  ;;  %v96_v13 = vrot.slane %v30_v8, 7  ;;  %v95_v14 = vrot.slane %v29_v9, 7  ;;  %v33_v30 = vld [vmem:[%s3686_s0 + $0x48] sm:$0xff]  ;;  %v32_v31 = vld [vmem:[%s3686_s0 + $0x40] sm:$0xff] }
   0x5   :  { %v152_v10 = vsub.f32 %v38_v3, %v104_v6  ;;  %v105_v16 = vrot.slane %v39_v12, 7  ;;  %v31_v32 = vld [vmem:[%s3686_s0 + $0x38] sm:$0xff]  ;;  %v99_v33 = vrot.slane %v33_v30, 7  ;;  %v98_v34 = vrot.slane %v32_v31, 7  ;;  %v34_v48 = vld [vmem:[%s3686_s0 + $0x50] sm:$0xff]  ;;  %v36_v57 = vld [vmem:[%s3686_s0 + $0x60] sm:$0xff] }
   0x6   :  { %v142_v11 = vsub.f32 %v28_v4, %v94_v7  ;;  %v144_v21 = vsub.f32 %v30_v8, %v96_v13  ;;  %v143_v22 = vsub.f32 %v29_v9, %v95_v14  ;;  %v97_v35 = vrot.slane %v31_v32, 7  ;;  %v35_v39 = vld [vmem:[%s3686_s0 + $0x58] sm:$0xff]  ;;  %v26_v49 = vld [vmem:[%s3686_s0 + $0x10] sm:$0xff]  ;;  %v24_v58 = vld [vmem:[%s3686_s0] sm:$0xff] }
   0x7   :  { %v153_v23 = vsub.f32 %v39_v12, %v105_v16  ;;  %v147_v36 = vsub.f32 %v33_v30, %v99_v33  ;;  %v146_v37 = vsub.f32 %v32_v31, %v98_v34  ;;  %v101_v42 = vrot.slane %v35_v39, 7  ;;  %v27_v56 = vld [vmem:[%s3686_s0 + $0x18] sm:$0xff]  ;;  %v25_v6 = vld [vmem:[%s3686_s0 + $0x8] sm:$0xff] }
   0x8   :  { %v145_v38 = vsub.f32 %v31_v32, %v97_v35  ;;  %v100_v51 = vrot.slane %v34_v48, 7  ;;  %v60_v52 = vrot.slane %v26_v49, 7  ;;  %v61_v61 = vrot.slane %v27_v56, 7  ;;  %v2847_v49 = vld [vmem:[%s3691_s5] ss:$4 sm:$0xff] }
   0x9   :  { %v149_v46 = vsub.f32 %v35_v39, %v101_v42  ;;  %v102_v62 = vrot.slane %v36_v57, 7  ;;  %v44_v63 = vrot.slane %v24_v58, 1 }
   0xa   :  { %69 = vperm.xlu0 %2585, %v40_v2   ;;  %v148_v54 = vsub.f32 %v34_v48, %v100_v51  ;;  %v247_v51 = vperm.slane %v2847_v49, 5 }
  0x74   :  { %v2666_v5 = vpop.permute.xlu0 %53 }
  0x7c   :  { %v2677_v15 = vpop.permute.xlu0 %69 }
  0x7d   :  { %v168_v17 = vmul.f32 %v152_v10, %v2677_v15  ;;  %v158_v18 = vmul.f32 %v142_v11, %v2677_v15  ;;  %v160_v24 = vmul.f32 %v144_v21, %v2677_v15  ;;  %v159_v25 = vmul.f32 %v143_v22, %v2677_v15 }
  0x7e   :  { %v169_v26 = vmul.f32 %v153_v23, %v2677_v15  ;;  %v163_v40 = vmul.f32 %v147_v36, %v2677_v15  ;;  %v162_v41 = vmul.f32 %v146_v37, %v2677_v15  ;;  %v161_v43 = vmul.f32 %v145_v38, %v2677_v15 }
  0x7f   :  { %v2681_v19 = vadd.f32 %v168_v17, %v38_v3  ;;  %v2683_v20 = vadd.f32 %v158_v18, %v28_v4  ;;  %v2694_v27 = vadd.f32 %v160_v24, %v30_v8  ;;  %v2696_v28 = vadd.f32 %v159_v25, %v29_v9 }
  0x80   :  { %v2698_v29 = vadd.f32 %v169_v26, %v39_v12  ;;  %v2727_v44 = vadd.f32 %v163_v40, %v33_v30  ;;  %v2729_v45 = vadd.f32 %v162_v41, %v32_v31  ;;  %v2731_v47 = vadd.f32 %v161_v43, %v31_v32  ;;  %v37_v30 = vld [vmem:[%s3686_s0 + $0x68] sm:$0xff] }
  0x81   :  { %214 = vrot.lane.b32.xlu2 %v2681_v19, %s2614_s9  ;;  %298 = vrot.lane.b32.xlu1 %v2683_v20, %s2615_s10  ;;  %v165_v50 = vmul.f32 %v149_v46, %v2677_v15  ;;  %v72_v55 = vmul.f32 %v2677_v15, %v60_v52  ;;  %v164_v59 = vmul.f32 %v148_v54, %v2677_v15  ;;  %v45_v10 = vrot.slane %v25_v6, 1 }
  0x82   :  { %194 = vrot.lane.b32.xlu0 %v2683_v20, %s2614_s9  ;;  %v73_v2 = vmul.f32 %v2677_v15, %v61_v61  ;;  %v150_v3 = vsub.f32 %v36_v57, %v102_v62  ;;  %v56_v4 = vmul.f32 %v2666_v5, %v44_v63  ;;  %v103_v31 = vrot.slane %v37_v30, 7 }
  0x83   :  { %v2746_v53 = vadd.f32 %v165_v50, %v35_v39  ;;  %v92_v60 = vrot.slane %v72_v55, 7  ;;  %v2765_v0 = vadd.f32 %v164_v59, %v34_v48  ;;  %v57_v16 = vmul.f32 %v2666_v5, %v45_v10  ;;  %v2852_v50 = vld [vmem:[%s3691_s5 + $0x1] ss:$4 sm:$0xff] }
  0x84   :  { %v93_v8 = vrot.slane %v73_v2, 7  ;;  %v166_v9 = vmul.f32 %v150_v3, %v2677_v15  ;;  %v90_v11 = vrot.slane %v56_v4, 7  ;;  %v151_v32 = vsub.f32 %v37_v30, %v103_v31 }
  0x85   :  { %v140_v1 = vsub.f32 %v72_v55, %v92_v60  ;;  %v91_v22 = vrot.slane %v57_v16, 7  ;;  %v218_v38 = vlaneseq  ;;  %v350_v52 = vperm.slane %v2852_v50, 5 }
  0x86   :  { %v141_v13 = vsub.f32 %v73_v2, %v93_v8  ;;  %v2782_v14 = vadd.f32 %v166_v9, %v36_v57  ;;  %v138_v17 = vsub.f32 %v56_v4, %v90_v11  ;;  %v167_v33 = vmul.f32 %v151_v32, %v2677_v15  ;;  %v2887_v9 = vld [vmem:[%s3691_s5 + $0x21] ss:$4 sm:$0xff] }
  0x87   :  { %v156_v7 = vmul.f32 %v140_v1, %v2677_v15  ;;  %v139_v5 = vsub.f32 %v57_v16, %v91_v22  ;;  %v2834_v42 = vand.u32 127, %v218_v38  ;;  %v248_v3 = vperm.slane %v2847_v49, 6 }
  0x88   :  { %v157_v18 = vmul.f32 %v141_v13, %v2677_v15  ;;  %v154_v21 = vmul.f32 %v138_v17, %v2677_v15  ;;  %v2822_v34 = vadd.f32 %v167_v33, %v37_v30  ;;  %v246_v22 = vperm.slane %v2847_v49, 4 }
  0x89   :  { %198 = vrot.lane.b32.xlu2 %v2694_v27, %s2614_s9  ;;  %300 = vrot.lane.b32.xlu1 %v2696_v28, %s2615_s10  ;;  %v2780_v12 = vadd.f32 %v156_v7, %v72_v55  ;;  %v155_v25 = vmul.f32 %v139_v5, %v2677_v15  ;;  %vm322_vm0 = vcmp.lt.s32.totalorder %v2834_v42, 127  ;;  %vm220_vm1 = vcmp.lt.s32.totalorder %v2834_v42, 1 }
  0x8a   :  { %216 = vrot.lane.b32.xlu0 %v2698_v29, %s2614_s9  ;;  %v2793_v23 = vadd.f32 %v157_v18, %v73_v2  ;;  %v2795_v24 = vadd.f32 %v154_v21, %v56_v4  ;;  %v2875_v2 = vld [vmem:[%s3691_s5 + $0x20] ss:$4 sm:$0xff]  ;;  %v249_v7 = vperm.slane %v2847_v49, 7  ;;  %v351_v18 = vperm.slane %v2852_v50, 6 }
  0x8b   :  { %v2804_v26 = vadd.f32 %v155_v25, %v57_v16  ;;  %v250_v6 = vperm.slane %v2875_v2, 0  ;;  %v353_v16 = vperm.slane %v2887_v9, 0  ;;  %v352_v21 = vperm.slane %v2852_v50, 7 }
  0x8c   :  { %v349_v30 = vperm.slane %v2852_v50, 4  ;;  %vm560_vm2 = vcmp.lt.s32.totalorder %v2834_v42, 112  ;;  %vm457_vm3 = vcmp.lt.s32.totalorder %v2834_v42, 16  ;;  %v2555_v42 = vld [vmem:[%s3687_s1 + $0x340] sm:$0xff] }
  0x91   :  { %302 = vrot.lane.b32.xlu2 %v2694_v27, %s2615_s10  ;;  %196 = vrot.lane.b32.xlu1 %v2696_v28, %s2614_s9 }
  0x92   :  { %320 = vrot.lane.b32.xlu0 %v2698_v29, %s2615_s10 }
  0x99   :  { %308 = vrot.lane.b32.xlu2 %v2727_v44, %s2615_s10  ;;  %202 = vrot.lane.b32.xlu1 %v2729_v45, %s2614_s9 }
  0x9a   :  { %200 = vrot.lane.b32.xlu0 %v2731_v47, %s2614_s9 }
  0xa1   :  { %208 = vrot.lane.b32.xlu2 %v2746_v53, %s2614_s9  ;;  %306 = vrot.lane.b32.xlu1 %v2729_v45, %s2615_s10 }
  0xa2   :  { %304 = vrot.lane.b32.xlu0 %v2731_v47, %s2615_s10 }
  0xa9   :  { %312 = vrot.lane.b32.xlu2 %v2746_v53, %s2615_s10  ;;  %206 = vrot.lane.b32.xlu1 %v2765_v0, %s2614_s9 }
  0xaa   :  { %204 = vrot.lane.b32.xlu0 %v2727_v44, %s2614_s9 }
  0xb1   :  { %310 = vrot.lane.b32.xlu1 %v2765_v0, %s2615_s10  ;;  %190 = vrot.lane.b32.xlu2 %v2780_v12, %s2614_s9 }
  0xb2   :  { %210 = vrot.lane.b32.xlu0 %v2782_v14, %s2614_s9 }
  0xb9   :  { %192 = vrot.lane.b32.xlu2 %v2793_v23, %s2614_s9  ;;  %186 = vrot.lane.b32.xlu1 %v2795_v24, %s2614_s9 }
  0xba   :  { %296 = vrot.lane.b32.xlu0 %v2793_v23, %s2615_s10 }
  0xc1   :  { %294 = vrot.lane.b32.xlu2 %v2780_v12, %s2615_s10  ;;  %188 = vrot.lane.b32.xlu1 %v2804_v26, %s2614_s9 }
  0xc2   :  { %314 = vrot.lane.b32.xlu0 %v2782_v14, %s2615_s10 }
  0xc9   :  { %290 = vrot.lane.b32.xlu2 %v2795_v24, %s2615_s10  ;;  %292 = vrot.lane.b32.xlu1 %v2804_v26, %s2615_s10 }
  0xca   :  { %318 = vrot.lane.b32.xlu0 %v2681_v19, %s2615_s10 }
  0xd1   :  { %212 = vrot.lane.b32.xlu2 %v2822_v34, %s2614_s9  ;;  %316 = vrot.lane.b32.xlu1 %v2822_v34, %s2615_s10  ;;  %s2616_s10 = smov 16  }
  0xdb   :  { %v2828_v35 = vpop.permute.xlu2 %214 }
  0xe3   :  { %v199_v36 = vpop.permute.xlu2 %198 }
  0xeb   :  { %v303_v37 = vpop.permute.xlu2 %302 }
  0xf3   :  { %v2830_v39 = vpop.permute.xlu2 %308  ;;  %v2832_v40 = vpop.permute.xlu1 %298 }
  0xf4   :  { %v195_v41 = vpop.permute.xlu0 %194 }
  0xfb   :  { %v2837_v15 = vpop.permute.xlu2 %208  ;;  %v301_v43 = vpop.permute.xlu1 %300 }
  0xfc   :  { %v333_v46 = vsel %vm322_vm0, %v2832_v40, %v301_v43  ;;  %v2842_v48 = vpop.permute.xlu0 %216  ;;  %v332_v56 = vsel %vm322_vm0, %v301_v43, %v303_v37 }
  0xfd   :  { %v382_v60 = vadd.f32 %v350_v52, %v332_v56 }
 0x103   :  { %v2857_v54 = vpop.permute.xlu2 %312  ;;  %v197_v55 = vpop.permute.xlu1 %196 }
 0x104   :  { %v231_v57 = vsel %vm220_vm1, %v195_v41, %v197_v55  ;;  %v2863_v58 = vpop.permute.xlu0 %320 }
 0x105   :  { %v279_v59 = vadd.f32 %v247_v51, %v231_v57 }
 0x107   :  { %v398_v61 = vmax.f32 %v279_v59, %v2696_v28  ;;  %v230_v28 = vsel %vm220_vm1, %v197_v55, %v199_v36 }
 0x108   :  { %v280_v11 = vadd.f32 %v248_v3, %v230_v28 }
 0x109   :  { %v2866_v62 = vmax.f32 %v398_v61, %v382_v60  ;;  %v381_v60 = vadd.f32 %v349_v30, %v333_v46 }
 0x10a   :  { %v399_v31 = vmax.f32 %v280_v11, %v2694_v27 }
 0x10b   :  { %v203_v63 = vpop.permute.xlu1 %202  ;;  %v2868_v1 = vpop.permute.xlu2 %190  ;;  %435 = vrot.lane.b32.xlu2 %v2866_v62, %s2616_s10 }
 0x10c   :  { %v201_v4 = vpop.permute.xlu0 %200 }
 0x10d   :  { %v228_v8 = vsel %vm220_vm1, %v201_v4, %v203_v63  ;;  %v229_v10 = vsel %vm220_vm1, %v199_v36, %v201_v4  ;;  %v251_v4 = vperm.slane %v2875_v2, 1 }
 0x10e   :  { %v282_v13 = vadd.f32 %v250_v6, %v228_v8  ;;  %v281_v17 = vadd.f32 %v249_v7, %v229_v10  ;;  %v252_v6 = vperm.slane %v2875_v2, 2 }
 0x110   :  { %v401_v38 = vmax.f32 %v282_v13, %v2729_v45  ;;  %v400_v55 = vmax.f32 %v281_v17, %v2731_v47  ;;  %v257_v47 = vperm.slane %v2875_v2, 7  ;;  %v354_v17 = vperm.slane %v2887_v9, 1 }
 0x113   :  { %v307_v5 = vpop.permute.xlu1 %306  ;;  %v193_v25 = vpop.permute.xlu2 %192 }
 0x114   :  { %v329_v32 = vsel %vm322_vm0, %v307_v5, %v2830_v39  ;;  %v305_v33 = vpop.permute.xlu0 %304  ;;  %v232_v36 = vsel %vm220_vm1, %v193_v25, %v195_v41 }
 0x115   :  { %v385_v43 = vadd.f32 %v353_v16, %v329_v32  ;;  %v330_v51 = vsel %vm322_vm0, %v305_v33, %v307_v5  ;;  %v331_v52 = vsel %vm322_vm0, %v303_v37, %v305_v33  ;;  %v278_v57 = vadd.f32 %v246_v22, %v232_v36 }
 0x116   :  { %v383_v27 = vadd.f32 %v351_v18, %v331_v52  ;;  %v384_v56 = vadd.f32 %v352_v21, %v330_v51  ;;  %v355_v18 = vperm.slane %v2887_v9, 2  ;;  %v360_v21 = vperm.slane %v2887_v9, 7 }
 0x117   :  { %v2908_v59 = vmax.f32 %v401_v38, %v385_v43  ;;  %v397_v61 = vmax.f32 %v278_v57, %v2683_v20  ;;  %v221_v20 = vsel %vm220_vm1, %v2828_v35, %v2842_v48  ;;  %v254_v22 = vperm.slane %v2875_v2, 4 }
 0x118   :  { %v2911_v41 = vmax.f32 %v399_v31, %v383_v27  ;;  %v2913_v45 = vmax.f32 %v400_v55, %v384_v56  ;;  %v289_v11 = vadd.f32 %v257_v47, %v221_v20  ;;  %v245_v52 = vperm.slane %v2847_v49, 3 }
 0x119   :  { %v2919_v37 = vmax.f32 %v397_v61, %v381_v60  ;;  %v256_v60 = vperm.slane %v2875_v2, 6  ;;  %v348_v47 = vperm.slane %v2852_v50, 3 }
 0x11a   :  { %437 = vrot.lane.b32.xlu0 %v2911_v41, %s2616_s10  ;;  %439 = vrot.lane.b32.xlu1 %v2913_v45, %s2616_s10  ;;  %v408_v5 = vmax.f32 %v289_v11, %v2698_v29 }
 0x11b   :  { %v207_v3 = vpop.permute.xlu1 %206  ;;  %v2923_v46 = vpop.permute.xlu2 %294 }
 0x11c   :  { %v225_v28 = vsel %vm220_vm1, %v207_v3, %v2837_v15  ;;  %v205_v7 = vpop.permute.xlu0 %204 }
 0x11d   :  { %v226_v8 = vsel %vm220_vm1, %v205_v7, %v207_v3  ;;  %v227_v10 = vsel %vm220_vm1, %v203_v63, %v205_v7 }
 0x11e   :  { %v283_v13 = vadd.f32 %v251_v4, %v227_v10  ;;  %v284_v16 = vadd.f32 %v252_v6, %v226_v8 }
 0x120   :  { %v402_v30 = vmax.f32 %v283_v13, %v2727_v44  ;;  %v403_v63 = vmax.f32 %v284_v16, %v2765_v0  ;;  %v253_v13 = vperm.slane %v2875_v2, 3 }
 0x123   :  { %v311_v31 = vpop.permute.xlu1 %310  ;;  %v2943_v32 = vpop.permute.xlu2 %290 }
 0x124   :  { %v327_v33 = vsel %vm322_vm0, %v311_v31, %v2857_v54  ;;  %v328_v36 = vsel %vm322_vm0, %v2830_v39, %v311_v31  ;;  %v211_v38 = vpop.permute.xlu0 %210  ;;  %v338_v29 = vsel %vm322_vm0, %v2863_v58, %v2943_v32  ;;  %v233_v39 = vsel %vm220_vm1, %v2868_v1, %v193_v25 }
 0x125   :  { %v386_v44 = vadd.f32 %v354_v17, %v328_v36  ;;  %v387_v43 = vadd.f32 %v355_v18, %v327_v33  ;;  %v224_v0 = vsel %vm220_vm1, %v2837_v15, %v211_v38  ;;  %v392_v51 = vadd.f32 %v360_v21, %v338_v29 }
 0x126   :  { %v2960_v55 = vadd.f32 %v254_v22, %v224_v0  ;;  %v255_v15 = vperm.slane %v2875_v2, 5  ;;  %v277_v61 = vadd.f32 %v245_v52, %v233_v39  ;;  %v244_v18 = vperm.slane %v2847_v49, 2 }
 0x127   :  { %v2965_v27 = vmax.f32 %v408_v5, %v392_v51  ;;  %v2967_v56 = vmax.f32 %v402_v30, %v386_v44  ;;  %v2969_v57 = vmax.f32 %v403_v63, %v387_v43  ;;  %v356_v21 = vperm.slane %v2887_v9, 3 }
 0x128   :  { %v396_v11 = vmax.f32 %v277_v61, %v2793_v23  ;;  %v242_v2 = vperm.slane %v2847_v49, 0  ;;  %v243_v63 = vperm.slane %v2847_v49, 1  ;;  %v346_v49 = vperm.slane %v2852_v50, 1 }
 0x129   :  { %455 = vrot.lane.b32.xlu2 %v2965_v27, %s2616_s10 }
 0x12b   :  { %v213_v3 = vpop.permute.xlu2 %212  ;;  %v187_v4 = vpop.permute.xlu1 %186 }
 0x12c   :  { %v297_v20 = vpop.permute.xlu0 %296  ;;  %v222_v25 = vsel %vm220_vm1, %v213_v3, %v2828_v35  ;;  %v223_v6 = vsel %vm220_vm1, %v211_v38, %v213_v3  ;;  %v285_v35 = vadd.f32 %v253_v13, %v225_v28  ;;  %v236_v28 = vsel %vm220_vm1, %v2842_v48, %v187_v4 }
 0x12d   :  { %v334_v7 = vsel %vm322_vm0, %v297_v20, %v2832_v40  ;;  %v2984_v8 = vadd.f32 %v255_v15, %v223_v6  ;;  %v288_v10 = vadd.f32 %v256_v60, %v222_v25  ;;  %v347_v40 = vperm.slane %v2852_v50, 2 }
 0x12e   :  { %v380_v16 = vadd.f32 %v348_v47, %v334_v7  ;;  %v335_v23 = vsel %vm322_vm0, %v2923_v46, %v297_v20  ;;  %v404_v36 = vmax.f32 %v285_v35, %v2746_v53  ;;  %v274_v43 = vadd.f32 %v242_v2, %v236_v28  ;;  %v2480_v35 = vld [vmem:[%s3687_s1 + $0xe8] sm:$0xff]  ;;  %v2457_v2 = vld [vmem:[%s3687_s1 + $0x30] sm:$0xff] }
 0x12f   :  { %v379_v44 = vadd.f32 %v347_v40, %v335_v23  ;;  %v359_v53 = vperm.slane %v2887_v9, 6  ;;  %v405_v7 = vmax.f32 %v2960_v55, %v2782_v14  ;;  %v2482_v14 = vld [vmem:[%s3687_s1 + $0xf8] sm:$0xff]  ;;  %v2481_v55 = vld [vmem:[%s3687_s1 + $0xf0] sm:$0xff]  ;;  %v2472_v40 = vld [vmem:[%s3687_s1 + $0xa8] sm:$0xff] }
 0x130   :  { %v2988_v17 = vmax.f32 %v396_v11, %v380_v16  ;;  %v393_v52 = vmax.f32 %v274_v43, %v2795_v24  ;;  %1746 = vmatpush.bf16.msra.mxu3 %v2482_v14  ;;  %v2465_v23 = vld [vmem:[%s3687_s1 + $0x70] sm:$0xff]  ;;  %v2464_v28 = vld [vmem:[%s3687_s1 + $0x68] sm:$0xff]  ;;  %v2454_v43 = vld [vmem:[%s3687_s1 + $0x18] sm:$0xff] }
 0x131   :  { %v2488_v14 = vld [vmem:[%s3687_s1 + $0x128] sm:$0xff] }
 0x132   :  { %431 = vrot.lane.b32.xlu1 %v2988_v17, %s2616_s10 }
 0x133   :  { %v189_v22 = vpop.permute.xlu1 %188 }
 0x134   :  { %v315_v5 = vpop.permute.xlu0 %314  ;;  %v234_v30 = vsel %vm220_vm1, %v189_v22, %v2868_v1  ;;  %v235_v29 = vsel %vm220_vm1, %v187_v4, %v189_v22  ;;  %v407_v4 = vmax.f32 %v288_v10, %v2681_v19  ;;  %v406_v10 = vmax.f32 %v2984_v8, %v2822_v34  ;;  %v2474_v34 = vld [vmem:[%s3687_s1 + $0xb8] sm:$0xff]  ;;  %v2473_v8 = vld [vmem:[%s3687_s1 + $0xb0] sm:$0xff]  ;;  %1747 = vmatpush.bf16.msra.mxu3 %v2481_v55  ;;  %v2479_v22 = vld [vmem:[%s3687_s1 + $0xe0] sm:$0xff] }
 0x135   :  { %v326_v31 = vsel %vm322_vm0, %v2857_v54, %v315_v5  ;;  %v276_v33 = vadd.f32 %v244_v18, %v234_v30  ;;  %v275_v48 = vadd.f32 %v243_v63, %v235_v29  ;;  %v345_v54 = vperm.slane %v2852_v50, 0  ;;  %1733 = vmatpush.bf16.msra.mxu2 %v2474_v34  ;;  %v2466_v18 = vld [vmem:[%s3687_s1 + $0x78] sm:$0xff]  ;;  %v2469_v29 = vld [vmem:[%s3687_s1 + $0x90] sm:$0xff] }
 0x136   :  { %v388_v38 = vadd.f32 %v356_v21, %v326_v31  ;;  %v2458_v21 = vld [vmem:[%s3687_s1 + $0x38] sm:$0xff]  ;;  %1720 = vmatpush.bf16.msra.mxu1 %v2466_v18  ;;  %v2456_v31 = vld [vmem:[%s3687_s1 + $0x28] sm:$0xff]  ;;  %v2509_v55 = vld [vmem:[%s3687_s1 + $0x1d0] sm:$0xff] }
 0x137   :  { %v395_v1 = vmax.f32 %v276_v33, %v2780_v12  ;;  %v394_v60 = vmax.f32 %v275_v48, %v2804_v26  ;;  %v357_v26 = vperm.slane %v2887_v9, 4  ;;  %1707 = vmatpush.bf16.msra.mxu0 %v2458_v21  ;;  %v2478_v30 = vld [vmem:[%s3687_s1 + $0xd8] sm:$0xff]  ;;  %v2477_v33 = vld [vmem:[%s3687_s1 + $0xd0] sm:$0xff]  ;;  %v2468_v48 = vld [vmem:[%s3687_s1 + $0x88] sm:$0xff] }
 0x138   :  { %v3013_v0 = vmax.f32 %v404_v36, %v388_v38  ;;  %1748 = vmatpush.bf16.msra.mxu3 %v2480_v35  ;;  %v2470_v63 = vld [vmem:[%s3687_s1 + $0x98] sm:$0xff]  ;;  %v2463_v36 = vld [vmem:[%s3687_s1 + $0x60] sm:$0xff]  ;;  %v2501_v21 = vld [vmem:[%s3687_s1 + $0x190] sm:$0xff] }
 0x139   :  { %v3015_v51 = vmax.f32 %v395_v1, %v379_v44  ;;  %1734 = vmatpush.bf16.msra.mxu2 %v2473_v8  ;;  %v2455_v38 = vld [vmem:[%s3687_s1 + $0x20] sm:$0xff]  ;;  %v2476_v44 = vld [vmem:[%s3687_s1 + $0xc8] sm:$0xff]  ;;  %v2462_v1 = vld [vmem:[%s3687_s1 + $0x58] sm:$0xff] }
 0x13a   :  { %534 = vrot.lane.b32.xlu1 %v2988_v17, %s2617_s15  ;;  %1721 = vmatpush.bf16.msra.mxu1 %v2465_v23  ;;  %v2502_v34 = vld [vmem:[%s3687_s1 + $0x198] sm:$0xff]  ;;  %v2495_v8 = vld [vmem:[%s3687_s1 + $0x160] sm:$0xff] }
 0x13b   :  { %429 = vrot.lane.b32.xlu0 %v3015_v51, %s2616_s10  ;;  %v293_v12 = vpop.permute.xlu1 %292  ;;  %1708 = vmatpush.bf16.msra.mxu0 %v2457_v2  ;;  %v2487_v35 = vld [vmem:[%s3687_s1 + $0x120] sm:$0xff]  ;;  %v2486_v23 = vld [vmem:[%s3687_s1 + $0x118] sm:$0xff]  ;;  %v2500_v2 = vld [vmem:[%s3687_s1 + $0x188] sm:$0xff] }
 0x13c   :  { %v319_v39 = vpop.permute.xlu0 %318  ;;  %v336_v15 = vsel %vm322_vm0, %v293_v12, %v2923_v46  ;;  %v337_v50 = vsel %vm322_vm0, %v2943_v32, %v293_v12  ;;  %v358_v32 = vperm.slane %v2887_v9, 5  ;;  %1749 = vmatpush.bf16.msra.mxu3 %v2479_v22  ;;  %v2453_v12 = vld [vmem:[%s3687_s1 + $0x10] sm:$0xff]  ;;  %v2494_v22 = vld [vmem:[%s3687_s1 + $0x158] sm:$0xff] }
 0x13d   :  { %v323_v61 = vsel %vm322_vm0, %v319_v39, %v2863_v58  ;;  %v377_v47 = vadd.f32 %v345_v54, %v337_v50  ;;  %v378_v3 = vadd.f32 %v346_v49, %v336_v15  ;;  %1735 = vmatpush.bf16.msra.mxu2 %v2472_v40  ;;  %v2475_v54 = vld [vmem:[%s3687_s1 + $0xc0] sm:$0xff]  ;;  %v2514_v49 = vld [vmem:[%s3687_s1 + $0x1f8] sm:$0xff]  ;;  %v2513_v15 = vld [vmem:[%s3687_s1 + $0x1f0] sm:$0xff] }
 0x13e   :  { %v391_v24 = vadd.f32 %v359_v53, %v323_v61  ;;  %1722 = vmatpush.bf16.msra.mxu1 %v2464_v28  ;;  %v2461_v53 = vld [vmem:[%s3687_s1 + $0x50] sm:$0xff]  ;;  %v2460_v50 = vld [vmem:[%s3687_s1 + $0x48] sm:$0xff] }
 0x13f   :  { %v3036_v20 = vmax.f32 %v393_v52, %v377_v47  ;;  %v3038_v25 = vmax.f32 %v394_v60, %v378_v3  ;;  %1709 = vmatpush.bf16.msra.mxu0 %v2456_v31  ;;  %v2467_v52 = vld [vmem:[%s3687_s1 + $0x80] sm:$0xff]  ;;  %v2452_v60 = vld [vmem:[%s3687_s1 + $0x8] sm:$0xff]  ;;  %v2505_v61 = vld [vmem:[%s3687_s1 + $0x1b0] sm:$0xff] }
 0x140   :  { %v3040_v46 = vmax.f32 %v407_v4, %v391_v24  ;;  %1750 = vmatpush.bf16.msra.mxu3 %v2478_v30  ;;  %v2512_v47 = vld [vmem:[%s3687_s1 + $0x1e8] sm:$0xff]  ;;  %v2459_v3 = vld [vmem:[%s3687_s1 + $0x40] sm:$0xff]  ;;  %v2498_v4 = vld [vmem:[%s3687_s1 + $0x178] sm:$0xff] }
 0x141   :  { %427 = vrot.lane.b32.xlu2 %v3038_v25, %s2616_s10  ;;  %v2451_v24 = vld [vmem:[%s3687_s1] sm:$0xff]  ;;  %v2508_v40 = vld [vmem:[%s3687_s1 + $0x1c8] sm:$0xff]  ;;  %v2493_v30 = vld [vmem:[%s3687_s1 + $0x150] sm:$0xff] }
 0x142   :  { %425 = vrot.lane.b32.xlu1 %v3036_v20, %s2616_s10  ;;  %1723 = vmatpush.bf16.msra.mxu1 %v2463_v36  ;;  %v2492_v36 = vld [vmem:[%s3687_s1 + $0x148] sm:$0xff] }
 0x143   :  { %532 = vrot.lane.b32.xlu0 %v3015_v51, %s2617_s15  ;;  %v317_v19 = vpop.permute.xlu1 %316  ;;  %1710 = vmatpush.bf16.msra.mxu0 %v2455_v38  ;;  %v2484_v38 = vld [vmem:[%s3687_s1 + $0x108] sm:$0xff] }
 0x144   :  { %v324_v58 = vsel %vm322_vm0, %v317_v19, %v319_v39  ;;  %v325_v6 = vsel %vm322_vm0, %v315_v5, %v317_v19  ;;  %v2471_v5 = vld [vmem:[%s3687_s1 + $0xa0] sm:$0xff]  ;;  %1751 = vmatpush.bf16.msra.mxu3 %v2477_v33  ;;  %v2506_v39 = vld [vmem:[%s3687_s1 + $0x1b8] sm:$0xff] }
 0x145   :  { %v389_v9 = vadd.f32 %v357_v26, %v325_v6  ;;  %v390_v11 = vadd.f32 %v358_v32, %v324_v58  ;;  %1736 = vmatpush.bf16.msra.mxu2 %v2471_v5  ;;  %v2490_v26 = vld [vmem:[%s3687_s1 + $0x138] sm:$0xff]  ;;  %v2504_v32 = vld [vmem:[%s3687_s1 + $0x1a8] sm:$0xff]  ;;  %v2511_v19 = vld [vmem:[%s3687_s1 + $0x1e0] sm:$0xff] }
 0x146   :  { %1724 = vmatpush.bf16.msra.mxu1 %v2462_v1  ;;  %v2497_v58 = vld [vmem:[%s3687_s1 + $0x170] sm:$0xff]  ;;  %v2507_v5 = vld [vmem:[%s3687_s1 + $0x1c0] sm:$0xff] }
 0x147   :  { %v3058_v13 = vmax.f32 %v405_v7, %v389_v9  ;;  %v3060_v16 = vmax.f32 %v406_v10, %v390_v11  ;;  %1711 = vmatpush.bf16.msra.mxu0 %v2454_v43  ;;  %v2489_v7 = vld [vmem:[%s3687_s1 + $0x130] sm:$0xff]  ;;  %v2503_v10 = vld [vmem:[%s3687_s1 + $0x1a0] sm:$0xff]  ;;  %v2510_v9 = vld [vmem:[%s3687_s1 + $0x1d8] sm:$0xff] }
 0x148   :  { %1752 = vmatpush.bf16.msra.mxu3 %v2476_v44  ;;  %v2496_v11 = vld [vmem:[%s3687_s1 + $0x168] sm:$0xff]  ;;  %v2499_v33 = vld [vmem:[%s3687_s1 + $0x180] sm:$0xff] }
 0x149   :  { %536 = vrot.lane.b32.xlu2 %v2919_v37, %s2617_s15  ;;  %1737 = vmatpush.bf16.msra.mxu2 %v2470_v63  ;;  %v2485_v63 = vld [vmem:[%s3687_s1 + $0x110] sm:$0xff]  ;;  %v2483_v43 = vld [vmem:[%s3687_s1 + $0x100] sm:$0xff] }
 0x14a   :  { %530 = vrot.lane.b32.xlu1 %v3038_v25, %s2617_s15  ;;  %1725 = vmatpush.bf16.msra.mxu1 %v2461_v53 }
 0x14b   :  { %528 = vrot.lane.b32.xlu0 %v3036_v20, %s2617_s15  ;;  %1712 = vmatpush.bf16.msra.mxu0 %v2453_v12 }
 0x14c   :  { %1753 = vmatpush.bf16.msra.mxu3 %v2475_v54  ;;  %v3313_v54 = vld [vmem:[%s3691_s5 + $0x2] ss:$4 sm:$0xff] }
 0x14d   :  { %1738 = vmatpush.bf16.msra.mxu2 %v2469_v29  ;;  %v2491_v29 = vld [vmem:[%s3687_s1 + $0x140] sm:$0xff]  ;;  %v483_v53 = vperm.slane %v3313_v54, 3 }
 0x14e   :  { %1726 = vmatpush.bf16.msra.mxu1 %v2460_v50 }
 0x14f   :  { %1713 = vmatpush.bf16.msra.mxu0 %v2452_v60  ;;  %v482_v60 = vperm.slane %v3313_v54, 2 }
 0x150   :  { %1798 = vmatpush.bf16.msrb.mxu3 %v2514_v49  ;;  %v3318_v49 = vld [vmem:[%s3691_s5 + $0x3] ss:$4 sm:$0xff] }
 0x151   :  { %540 = vrot.lane.b32.xlu2 %v2911_v41, %s2617_s15  ;;  %1739 = vmatpush.bf16.msra.mxu2 %v2468_v48 }
 0x152   :  { %544 = vrot.lane.b32.xlu1 %v2908_v59, %s2617_s15  ;;  %1727 = vmatpush.bf16.msra.mxu1 %v2459_v3 }
 0x153   :  { %542 = vrot.lane.b32.xlu0 %v2913_v45, %s2617_s15  ;;  %1714 = vmatpush.bf16.msra.mxu0 %v2451_v24 }
 0x154   :  { %1799 = vmatpush.bf16.msrb.mxu3 %v2513_v15 }
 0x155   :  { %1740 = vmatpush.bf16.msra.mxu2 %v2467_v52  ;;  %v586_v52 = vperm.slane %v3318_v49, 3 }
 0x156   :  { %1772 = vmatpush.bf16.msrb.mxu1 %v2498_v4 }
 0x157   :  { %1759 = vmatpush.bf16.msrb.mxu0 %v2490_v26 }
 0x158   :  { %1800 = vmatpush.bf16.msrb.mxu3 %v2512_v47 }
 0x159   :  { %433 = vrot.lane.b32.xlu2 %v2919_v37, %s2616_s10  ;;  %1785 = vmatpush.bf16.msrb.mxu2 %v2506_v39 }
 0x15a   :  { %443 = vrot.lane.b32.xlu1 %v2967_v56, %s2616_s10  ;;  %1773 = vmatpush.bf16.msrb.mxu1 %v2497_v58 }
 0x15b   :  { %538 = vrot.lane.b32.xlu0 %v2866_v62, %s2617_s15  ;;  %1760 = vmatpush.bf16.msrb.mxu0 %v2489_v7 }
 0x15c   :  { %1801 = vmatpush.bf16.msrb.mxu3 %v2511_v19 }
 0x15d   :  { %1786 = vmatpush.bf16.msrb.mxu2 %v2505_v61 }
 0x15e   :  { %1774 = vmatpush.bf16.msrb.mxu1 %v2496_v11 }
 0x15f   :  { %1761 = vmatpush.bf16.msrb.mxu0 %v2488_v14 }
 0x160   :  { %1802 = vmatpush.bf16.msrb.mxu3 %v2510_v9  ;;  %v481_v9 = vperm.slane %v3313_v54, 1 }
 0x161   :  { %445 = vrot.lane.b32.xlu2 %v2969_v57, %s2616_s10  ;;  %1787 = vmatpush.bf16.msrb.mxu2 %v2504_v32  ;;  %v585_v32 = vperm.slane %v3318_v49, 2 }
 0x162   :  { %548 = vrot.lane.b32.xlu1 %v2969_v57, %s2617_s15  ;;  %1775 = vmatpush.bf16.msrb.mxu1 %v2495_v8 }
 0x163   :  { %447 = vrot.lane.b32.xlu0 %v3013_v0, %s2616_s10  ;;  %1762 = vmatpush.bf16.msrb.mxu0 %v2487_v35 }
 0x164   :  { %1803 = vmatpush.bf16.msrb.mxu3 %v2509_v55 }
 0x165   :  { %v3232_v6 = vpop.permute.xlu2 %435  ;;  %1788 = vmatpush.bf16.msrb.mxu2 %v2503_v10  ;;  %v2546_v10 = vld [vmem:[%s3687_s1 + $0x2f8] sm:$0xff] }
 0x166   :  { %1776 = vmatpush.bf16.msrb.mxu1 %v2494_v22 }
 0x167   :  { %1763 = vmatpush.bf16.msrb.mxu0 %v2486_v23  ;;  %v584_v23 = vperm.slane %v3318_v49, 1 }
 0x168   :  { %1804 = vmatpush.bf16.msrb.mxu3 %v2508_v40  ;;  %v2545_v40 = vld [vmem:[%s3687_s1 + $0x2f0] sm:$0xff] }
 0x169   :  { %550 = vrot.lane.b32.xlu2 %v3013_v0, %s2617_s15  ;;  %1789 = vmatpush.bf16.msrb.mxu2 %v2502_v34  ;;  %v480_v34 = vperm.slane %v3313_v54, 0 }
 0x16a   :  { %441 = vrot.lane.b32.xlu1 %v2908_v59, %s2616_s10  ;;  %1777 = vmatpush.bf16.msrb.mxu1 %v2493_v30  ;;  %v583_v30 = vperm.slane %v3318_v49, 0 }
 0x16b   :  { %552 = vrot.lane.b32.xlu0 %v3058_v13, %s2617_s15  ;;  %1764 = vmatpush.bf16.msrb.mxu0 %v2485_v63 }
 0x16c   :  { %1805 = vmatpush.bf16.msrb.mxu3 %v2507_v5 }
 0x16d   :  { %1790 = vmatpush.bf16.msrb.mxu2 %v2501_v21 }
 0x16e   :  { %1778 = vmatpush.bf16.msrb.mxu1 %v2492_v36 }
 0x16f   :  { %1765 = vmatpush.bf16.msrb.mxu0 %v2484_v38  ;;  %v2544_v38 = vld [vmem:[%s3687_s1 + $0x2e8] sm:$0xff] }
 0x171   :  { %546 = vrot.lane.b32.xlu2 %v2967_v56, %s2617_s15  ;;  %1791 = vmatpush.bf16.msrb.mxu2 %v2500_v2  ;;  %v2538_v2 = vld [vmem:[%s3687_s1 + $0x2b8] sm:$0xff] }
 0x172   :  { %453 = vrot.lane.b32.xlu1 %v3040_v46, %s2616_s10  ;;  %1779 = vmatpush.bf16.msrb.mxu1 %v2491_v29  ;;  %v486_v29 = vperm.slane %v3313_v54, 6 }
 0x173   :  { %451 = vrot.lane.b32.xlu0 %v3060_v16, %s2616_s10  ;;  %1766 = vmatpush.bf16.msrb.mxu0 %v2483_v43 }
 0x175   :  { %1792 = vmatpush.bf16.msrb.mxu2 %v2499_v33 }
 0x179   :  { %556 = vrot.lane.b32.xlu2 %v3040_v46, %s2617_s15 }
 0x17a   :  { %449 = vrot.lane.b32.xlu1 %v3058_v13, %s2616_s10  ;;  %s1923_s10 = sshll.u32 %s3692_s6, 4  ;;  %s1924_s10 = int_to_ptr.hbm [resolvable:$true] %s1923_s10 }
 0x17b   :  { %558 = vrot.lane.b32.xlu0 %v2965_v27, %s2617_s15 }
 0x181   :  { %554 = vrot.lane.b32.xlu2 %v3060_v16, %s2617_s15 }
 0x183   :  { %v3258_v18 = vpop.permute.xlu2 %455 }
 0x18c   :  { %v3284_v28 = vpop.permute.xlu1 %439  ;;  %v3303_v1 = vpop.permute.xlu0 %437 }
 0x19b   :  { %v428_v31 = vpop.permute.xlu2 %427 }
 0x1a3   :  { %v3308_v48 = vpop.permute.xlu2 %536 }
 0x1a4   :  { %v3301_v44 = vpop.permute.xlu1 %431 }
 0x1ab   :  { %v3333_v3 = vpop.permute.xlu2 %540 }
 0x1ac   :  { %v535_v12 = vpop.permute.xlu1 %534 }
 0x1ad   :  { %v430_v39 = vpop.permute.xlu0 %429  ;;  %v572_v15 = vsel %vm560_vm2, %v535_v12, %v3308_v48 }
 0x1ae   :  { %v470_v50 = vsel %vm457_vm3, %v430_v39, %v3301_v44  ;;  %v471_v47 = vsel %vm457_vm3, %v428_v31, %v430_v39  ;;  %v618_v4 = vadd.f32 %v586_v52, %v572_v15  ;;  %v467_v39 = vsel %vm457_vm3, %v3232_v6, %v3303_v1 }
 0x1af   :  { %v515_v61 = vadd.f32 %v483_v53, %v470_v50  ;;  %v514_v26 = vadd.f32 %v482_v60, %v471_v47  ;;  %v487_v15 = vperm.slane %v3313_v54, 7 }
 0x1b1   :  { %v634_v24 = vmax.f32 %v515_v61, %v2988_v17  ;;  %v633_v8 = vmax.f32 %v514_v26, %v3015_v51  ;;  %v466_v61 = vsel %vm457_vm3, %v3303_v1, %v3284_v28  ;;  %v589_v1 = vperm.slane %v3318_v49, 6 }
 0x1b3   :  { %v650_v19 = vmax.f32 %v634_v24, %v618_v4  ;;  %v434_v5 = vpop.permute.xlu2 %433  ;;  %v518_v24 = vadd.f32 %v486_v29, %v467_v39 }
 0x1b4   :  { %v426_v58 = vpop.permute.xlu1 %425 }
 0x1b5   :  { %v533_v7 = vpop.permute.xlu0 %532  ;;  %v666_v14 = vpack.c.bf16 %v650_v19, %v650_v19  ;;  %v472_v17 = vsel %vm457_vm3, %v426_v58, %v428_v31  ;;  %v473_v35 = vsel %vm457_vm3, %v3258_v18, %v426_v58  ;;  %v519_v19 = vadd.f32 %v487_v15, %v466_v61 }
 0x1b6   :  { %v573_v11 = vsel %vm560_vm2, %v533_v7, %v535_v12  ;;  %v513_v22 = vadd.f32 %v481_v9, %v472_v17  ;;  %v512_v51 = vadd.f32 %v480_v34, %v473_v35  ;;  %v2537_v12 = vld [vmem:[%s3687_s1 + $0x2b0] sm:$0xff]  ;;  %v590_v58 = vperm.slane %v3318_v49, 7 }
 0x1b7   :  { %v617_v55 = vadd.f32 %v585_v32, %v573_v11  ;;  %1754 = vmatmul.bf16.vlgmr.msra.gmra.mxu3 %v666_v14  ;;  %v2522_v32 = vld [vmem:[%s3687_s1 + $0x238] sm:$0xff]  ;;  %v484_v11 = vperm.slane %v3313_v54, 4  ;;  %v2529_v17 = vld [vmem:[%s3687_s1 + $0x270] sm:$0xff] }
 0x1b8   :  { %1850 = vmatpush.bf16.msra.mxu3 %v2546_v10  ;;  %v632_v52 = vmax.f32 %v513_v22, %v3038_v25  ;;  %v631_v60 = vmax.f32 %v512_v51, %v3036_v20  ;;  %v2530_v25 = vld [vmem:[%s3687_s1 + $0x278] sm:$0xff]  ;;  %v2536_v20 = vld [vmem:[%s3687_s1 + $0x2a8] sm:$0xff]  ;;  %v2543_v10 = vld [vmem:[%s3687_s1 + $0x2e0] sm:$0xff]  ;;  %v469_v22 = vsel %vm457_vm3, %v3301_v44, %v434_v5  ;;  %v587_v44 = vperm.slane %v3318_v49, 4 }
 0x1b9   :  { %v649_v21 = vmax.f32 %v633_v8, %v617_v55  ;;  %v637_v55 = vmax.f32 %v518_v24, %v2911_v41  ;;  %v485_v8 = vperm.slane %v3313_v54, 5  ;;  %v2535_v41 = vld [vmem:[%s3687_s1 + $0x2a0] sm:$0xff]  ;;  %v638_v54 = vmax.f32 %v519_v19, %v2913_v45  ;;  %v2542_v51 = vld [vmem:[%s3687_s1 + $0x2d8] sm:$0xff]  ;;  %v2528_v45 = vld [vmem:[%s3687_s1 + $0x268] sm:$0xff] }
 0x1bb   :  { %v665_v31 = vpack.c.bf16 %v649_v21, %v649_v21  ;;  %v3400_v14 = vpop.permute.xlu2 %445 }
 0x1bc   :  { %v531_v63 = vpop.permute.xlu1 %530  ;;  %1851 = vmatpush.bf16.msra.mxu3 %v2545_v40  ;;  %v2521_v40 = vld [vmem:[%s3687_s1 + $0x230] sm:$0xff] }
 0x1bd   :  { %v574_v33 = vsel %vm560_vm2, %v531_v63, %v533_v7  ;;  %v3360_v36 = vpop.permute.xlu0 %528  ;;  %1741 = vmatmul.bf16.vlgmr.msra.gmra.mxu2 %v665_v31 }
 0x1be   :  { %v616_v43 = vadd.f32 %v584_v23, %v574_v33  ;;  %v575_v53 = vsel %vm560_vm2, %v3360_v36, %v531_v63  ;;  %1837 = vmatpush.bf16.msra.mxu2 %v2538_v2  ;;  %v516_v33 = vadd.f32 %v484_v11, %v469_v22  ;;  %v2517_v22 = vld [vmem:[%s3687_s1 + $0x210] sm:$0xff] }
 0x1bf   :  { %v615_v50 = vadd.f32 %v583_v30, %v575_v53  ;;  %v468_v30 = vsel %vm457_vm3, %v434_v5, %v3232_v6  ;;  %v588_v6 = vperm.slane %v3318_v49, 5  ;;  %v2534_v53 = vld [vmem:[%s3687_s1 + $0x298] sm:$0xff]  ;;  %v2527_v49 = vld [vmem:[%s3687_s1 + $0x260] sm:$0xff] }
 0x1c0   :  { %v648_v47 = vmax.f32 %v632_v52, %v616_v43  ;;  %1852 = vmatpush.bf16.msra.mxu3 %v2544_v38  ;;  %v2520_v38 = vld [vmem:[%s3687_s1 + $0x228] sm:$0xff]  ;;  %v517_v29 = vadd.f32 %v485_v8, %v468_v30 }
 0x1c1   :  { %v647_v4 = vmax.f32 %v631_v60, %v615_v50  ;;  %v3446_v52 = vld [vmem:[%s3691_s5 + $0x22] ss:$4 sm:$0xff]  ;;  %v635_v50 = vmax.f32 %v516_v33, %v2919_v37 }
 0x1c2   :  { %1838 = vmatpush.bf16.msra.mxu2 %v2537_v12  ;;  %v664_v26 = vpack.c.bf16 %v648_v47, %v648_v47  ;;  %v2541_v12 = vld [vmem:[%s3687_s1 + $0x2d0] sm:$0xff]  ;;  %v2519_v47 = vld [vmem:[%s3687_s1 + $0x220] sm:$0xff]  ;;  %v490_v37 = vperm.slane %v3446_v52, 2  ;;  %v2524_v33 = vld [vmem:[%s3687_s1 + $0x248] sm:$0xff] }
 0x1c3   :  { %v663_v7 = vpack.c.bf16 %v647_v4, %v647_v4  ;;  %v3464_v4 = vpop.permute.xlu2 %550 }
 0x1c4   :  { %1728 = vmatmul.bf16.vlgmr.msra.gmra.mxu1 %v664_v26  ;;  %v3397_v9 = vpop.permute.xlu1 %544  ;;  %1853 = vmatpush.bf16.msra.mxu3 %v2543_v10 }
 0x1c5   :  { %1824 = vmatpush.bf16.msra.mxu1 %v2530_v25  ;;  %v543_v34 = vpop.permute.xlu0 %542  ;;  %1715 = vmatmul.bf16.vlgmr.msra.gmra.mxu0 %v663_v7  ;;  %v636_v25 = vmax.f32 %v517_v29, %v2866_v62  ;;  %v2518_v7 = vld [vmem:[%s3687_s1 + $0x218] sm:$0xff] }
 0x1c6   :  { %v568_v35 = vsel %vm560_vm2, %v543_v34, %v3397_v9  ;;  %v569_v21 = vsel %vm560_vm2, %v3333_v3, %v543_v34  ;;  %1811 = vmatpush.bf16.msra.mxu0 %v2522_v32  ;;  %1839 = vmatpush.bf16.msra.mxu2 %v2536_v20  ;;  %v3480_v32 = vld [vmem:[%s3691_s5 + $0x23] ss:$4 sm:$0xff] }
 0x1c7   :  { %v621_v23 = vadd.f32 %v589_v1, %v569_v21  ;;  %v622_v2 = vadd.f32 %v590_v58, %v568_v35  ;;  %v2526_v20 = vld [vmem:[%s3687_s1 + $0x258] sm:$0xff]  ;;  %v593_v58 = vperm.slane %v3480_v32, 2  ;;  %v591_v29 = vperm.slane %v3480_v32, 0 }
 0x1c8   :  { %1854 = vmatpush.bf16.msra.mxu3 %v2542_v51  ;;  %v2578_v35 = vld [vmem:[%s3687_s1 + $0x3f8] sm:$0xff]  ;;  %v2531_v51 = vld [vmem:[%s3687_s1 + $0x280] sm:$0xff] }
 0x1c9   :  { %1825 = vmatpush.bf16.msra.mxu1 %v2529_v17  ;;  %v653_v31 = vmax.f32 %v637_v55, %v621_v23  ;;  %v654_v63 = vmax.f32 %v638_v54, %v622_v2  ;;  %v2532_v17 = vld [vmem:[%s3687_s1 + $0x288] sm:$0xff]  ;;  %v2539_v55 = vld [vmem:[%s3687_s1 + $0x2c0] sm:$0xff]  ;;  %v491_v2 = vperm.slane %v3446_v52, 3 }
 0x1ca   :  { %1812 = vmatpush.bf16.msra.mxu0 %v2521_v40  ;;  %1840 = vmatpush.bf16.msra.mxu2 %v2535_v41  ;;  %v2525_v41 = vld [vmem:[%s3687_s1 + $0x250] sm:$0xff] }
 0x1cb   :  { %v669_v5 = vpack.c.bf16 %v653_v31, %v653_v31  ;;  %v670_v43 = vpack.c.bf16 %v654_v63, %v654_v63  ;;  %v547_v31 = vpop.permute.xlu2 %546 }
 0x1cc   :  { %v3448_v39 = vpop.permute.xlu1 %443  ;;  %1855 = vmatpush.bf16.msra.mxu3 %v2541_v12 }
 0x1cd   :  { %1826 = vmatpush.bf16.msra.mxu1 %v2528_v45  ;;  %v539_v15 = vpop.permute.xlu0 %538  ;;  %1793 = vmatmul.bf16.vlgmr.msrb.gmra.mxu2 %v669_v5  ;;  %v463_v62 = vsel %vm457_vm3, %v3448_v39, %v3400_v14  ;;  %v2570_v45 = vld [vmem:[%s3687_s1 + $0x3b8] sm:$0xff]  ;;  %v594_v5 = vperm.slane %v3480_v32, 3 }
 0x1ce   :  { %v570_v60 = vsel %vm560_vm2, %v539_v15, %v3333_v3  ;;  %v571_v61 = vsel %vm560_vm2, %v3308_v48, %v539_v15  ;;  %1806 = vmatmul.bf16.vlgmr.msrb.gmra.mxu3 %v670_v43  ;;  %1813 = vmatpush.bf16.msra.mxu0 %v2520_v38  ;;  %v2533_v48 = vld [vmem:[%s3687_s1 + $0x290] sm:$0xff]  ;;  %v2540_v3 = vld [vmem:[%s3687_s1 + $0x2c8] sm:$0xff]  ;;  %v522_v10 = vadd.f32 %v490_v37, %v463_v62 }
 0x1cf   :  { %v619_v24 = vadd.f32 %v587_v44, %v571_v61  ;;  %v620_v26 = vadd.f32 %v588_v6, %v570_v60  ;;  %1841 = vmatpush.bf16.msra.mxu2 %v2534_v53  ;;  %v488_v44 = vperm.slane %v3446_v52, 0  ;;  %v2516_v38 = vld [vmem:[%s3687_s1 + $0x208] sm:$0xff]  ;;  %v567_v43 = vsel %vm560_vm2, %v3397_v9, %v547_v31  ;;  %v2569_v15 = vld [vmem:[%s3687_s1 + $0x3b0] sm:$0xff] }
 0x1d0   :  { %1856 = vmatpush.bf16.msra.mxu3 %v2540_v3  ;;  %v641_v23 = vmax.f32 %v522_v10, %v2969_v57  ;;  %v2577_v57 = vld [vmem:[%s3687_s1 + $0x3f0] sm:$0xff]  ;;  %v592_v53 = vperm.slane %v3480_v32, 1 }
 0x1d1   :  { %1827 = vmatpush.bf16.msra.mxu1 %v2527_v49  ;;  %v651_v19 = vmax.f32 %v635_v50, %v619_v24  ;;  %v652_v1 = vmax.f32 %v636_v25, %v620_v26  ;;  %v2576_v49 = vld [vmem:[%s3687_s1 + $0x3e8] sm:$0xff]  ;;  %v2523_v25 = vld [vmem:[%s3687_s1 + $0x240] sm:$0xff] }
 0x1d2   :  { %1814 = vmatpush.bf16.msra.mxu0 %v2519_v47 }
 0x1d3   :  { %1842 = vmatpush.bf16.msra.mxu2 %v2533_v48  ;;  %v667_v11 = vpack.c.bf16 %v651_v19, %v651_v19  ;;  %v668_v34 = vpack.c.bf16 %v652_v1, %v652_v1  ;;  %v623_v48 = vadd.f32 %v591_v29, %v567_v43 }
 0x1d4   :  { %v549_v8 = vpop.permute.xlu1 %548  ;;  %1857 = vmatpush.bf16.msra.mxu3 %v2539_v55 }
 0x1d5   :  { %1828 = vmatpush.bf16.msra.mxu1 %v2526_v20  ;;  %v565_v21 = vsel %vm560_vm2, %v549_v8, %v3464_v4  ;;  %v3501_v40 = vpop.permute.xlu0 %447  ;;  %1767 = vmatmul.bf16.vlgmr.msrb.gmra.mxu0 %v667_v11  ;;  %v566_v50 = vsel %vm560_vm2, %v547_v31, %v549_v8  ;;  %v2554_v20 = vld [vmem:[%s3687_s1 + $0x338] sm:$0xff] }
 0x1d6   :  { %v625_v54 = vadd.f32 %v593_v58, %v565_v21  ;;  %1780 = vmatmul.bf16.vlgmr.msrb.gmra.mxu1 %v668_v34  ;;  %1815 = vmatpush.bf16.msra.mxu0 %v2518_v7  ;;  %v462_v30 = vsel %vm457_vm3, %v3400_v14, %v3501_v40  ;;  %v489_v14 = vperm.slane %v3446_v52, 1  ;;  %v624_v19 = vadd.f32 %v592_v53, %v566_v50  ;;  %v2568_v58 = vld [vmem:[%s3687_s1 + $0x3a8] sm:$0xff]  ;;  %v2553_v34 = vld [vmem:[%s3687_s1 + $0x330] sm:$0xff]  ;;  %v2574_v21 = vld [vmem:[%s3687_s1 + $0x3d8] sm:$0xff] }
 0x1d7   :  { %1843 = vmatpush.bf16.msra.mxu2 %v2532_v17  ;;  %v523_v6 = vadd.f32 %v491_v2, %v462_v30  ;;  %v2573_v30 = vld [vmem:[%s3687_s1 + $0x3d0] sm:$0xff]  ;;  %v493_v50 = vperm.slane %v3446_v52, 5 }
 0x1d8   :  { %1902 = vmatpush.bf16.msrb.mxu3 %v2578_v35  ;;  %v657_v63 = vmax.f32 %v641_v23, %v625_v54  ;;  %v2567_v35 = vld [vmem:[%s3687_s1 + $0x3a0] sm:$0xff]  ;;  %v2560_v54 = vld [vmem:[%s3687_s1 + $0x368] sm:$0xff] }
 0x1d9   :  { %1829 = vmatpush.bf16.msra.mxu1 %v2525_v41  ;;  %v642_v3 = vmax.f32 %v523_v6, %v3013_v0  ;;  %v2575_v0 = vld [vmem:[%s3687_s1 + $0x3e0] sm:$0xff]  ;;  %v2552_v23 = vld [vmem:[%s3687_s1 + $0x328] sm:$0xff]  ;;  %v597_v6 = vperm.slane %v3480_v32, 6 }
 0x1da   :  { %1816 = vmatpush.bf16.msra.mxu0 %v2517_v22  ;;  %v673_v60 = vpack.c.bf16 %v657_v63, %v657_v63  ;;  %v495_v22 = vperm.slane %v3446_v52, 7  ;;  %v494_v63 = vperm.slane %v3446_v52, 6 }
 0x1db   :  { %1844 = vmatpush.bf16.msra.mxu2 %v2531_v51  ;;  %v2566_v51 = vld [vmem:[%s3687_s1 + $0x398] sm:$0xff] }
 0x1dc   :  { %1903 = vmatpush.bf16.msrb.mxu3 %v2577_v57  ;;  %v442_v12 = vpop.permute.xlu1 %441  ;;  %v2559_v57 = vld [vmem:[%s3687_s1 + $0x360] sm:$0xff] }
 0x1dd   :  { %1830 = vmatpush.bf16.msra.mxu1 %v2524_v33  ;;  %v464_v9 = vsel %vm457_vm3, %v442_v12, %v3448_v39  ;;  %v465_v61 = vsel %vm457_vm3, %v3284_v28, %v442_v12  ;;  %v3552_v47 = vpop.permute.xlu0 %552  ;;  %v2562_v39 = vld [vmem:[%s3687_s1 + $0x378] sm:$0xff]  ;;  %v2515_v28 = vld [vmem:[%s3687_s1 + $0x200] sm:$0xff] }
 0x1de   :  { %v520_v37 = vadd.f32 %v488_v44, %v465_v61  ;;  %v521_v24 = vadd.f32 %v489_v14, %v464_v9  ;;  %v564_v26 = vsel %vm560_vm2, %v3464_v4, %v3552_v47  ;;  %1817 = vmatpush.bf16.msra.mxu0 %v2516_v38  ;;  %1845 = vmatmul.bf16.vlgmr.msra.gmra.mxu2 %v673_v60  ;;  %v2551_v33 = vld [vmem:[%s3687_s1 + $0x320] sm:$0xff]  ;;  %v2565_v14 = vld [vmem:[%s3687_s1 + $0x390] sm:$0xff]  ;;  %v2572_v38 = vld [vmem:[%s3687_s1 + $0x3c8] sm:$0xff]  ;;  %v492_v61 = vperm.slane %v3446_v52, 4 }
 0x1df   :  { %1889 = vmatpush.bf16.msrb.mxu2 %v2570_v45  ;;  %v626_v62 = vadd.f32 %v594_v5, %v564_v26  ;;  %v557_v45 = vpop.permute.xlu2 %556  ;;  %v2558_v12 = vld [vmem:[%s3687_s1 + $0x358] sm:$0xff]  ;;  %v2557_v52 = vld [vmem:[%s3687_s1 + $0x350] sm:$0xff] }
 0x1e0   :  { %v639_v4 = vmax.f32 %v520_v37, %v2908_v59  ;;  %v640_v1 = vmax.f32 %v521_v24, %v2967_v56  ;;  %1904 = vmatpush.bf16.msrb.mxu3 %v2576_v49  ;;  %v2561_v59 = vld [vmem:[%s3687_s1 + $0x370] sm:$0xff]  ;;  %v2550_v9 = vld [vmem:[%s3687_s1 + $0x318] sm:$0xff] }
 0x1e1   :  { %v658_v7 = vmax.f32 %v642_v3, %v626_v62  ;;  %1831 = vmatpush.bf16.msra.mxu1 %v2523_v25  ;;  %v2571_v25 = vld [vmem:[%s3687_s1 + $0x3c0] sm:$0xff]  ;;  %v2549_v62 = vld [vmem:[%s3687_s1 + $0x310] sm:$0xff] }
 0x1e2   :  { %v655_v10 = vmax.f32 %v639_v4, %v623_v48  ;;  %v656_v11 = vmax.f32 %v640_v1, %v624_v19  ;;  %1818 = vmatpush.bf16.msra.mxu0 %v2515_v28  ;;  %v596_v19 = vperm.slane %v3480_v32, 5  ;;  %v595_v1 = vperm.slane %v3480_v32, 4 }
 0x1e3   :  { %1890 = vmatpush.bf16.msrb.mxu2 %v2569_v15  ;;  %v674_v56 = vpack.c.bf16 %v658_v7, %v658_v7 }
 0x1e4   :  { %v671_v17 = vpack.c.bf16 %v655_v10, %v655_v10  ;;  %v672_v55 = vpack.c.bf16 %v656_v11, %v656_v11  ;;  %1905 = vmatpush.bf16.msrb.mxu3 %v2575_v0  ;;  %v454_v8 = vpop.permute.xlu1 %453  ;;  %v2548_v10 = vld [vmem:[%s3687_s1 + $0x308] sm:$0xff] }
 0x1e5   :  { %1876 = vmatpush.bf16.msrb.mxu1 %v2562_v39  ;;  %v452_v41 = vpop.permute.xlu0 %451  ;;  %1858 = vmatmul.bf16.vlgmr.msra.gmra.mxu3 %v674_v56  ;;  %v458_v2 = vsel %vm457_vm3, %v454_v8, %v3258_v18  ;;  %v598_v18 = vperm.slane %v3480_v32, 7 }
 0x1e6   :  { %1863 = vmatpush.bf16.msrb.mxu0 %v2554_v20  ;;  %1832 = vmatmul.bf16.vlgmr.msra.gmra.mxu1 %v672_v55  ;;  %v527_v31 = vadd.f32 %v495_v22, %v458_v2  ;;  %v459_v44 = vsel %vm457_vm3, %v452_v41, %v454_v8 }
 0x1e7   :  { %1891 = vmatpush.bf16.msrb.mxu2 %v2568_v58  ;;  %1819 = vmatmul.bf16.vlgmr.msra.gmra.mxu0 %v671_v17  ;;  %v526_v49 = vadd.f32 %v494_v63, %v459_v44  ;;  %v555_v39 = vpop.permute.xlu2 %554  ;;  %v2556_v58 = vld [vmem:[%s3687_s1 + $0x348] sm:$0xff] }
 0x1e8   :  { %1906 = vmatpush.bf16.msrb.mxu3 %v2574_v21  ;;  %v646_v15 = vmax.f32 %v527_v31, %v2965_v27  ;;  %v2564_v27 = vld [vmem:[%s3687_s1 + $0x388] sm:$0xff]  ;;  %v563_v0 = vsel %vm560_vm2, %v3552_v47, %v555_v39 }
 0x1e9   :  { %1877 = vmatpush.bf16.msrb.mxu1 %v2561_v59  ;;  %v645_v28 = vmax.f32 %v526_v49, %v3040_v46  ;;  %v562_v46 = vsel %vm560_vm2, %v555_v39, %v557_v45  ;;  %v627_v56 = vadd.f32 %v595_v1, %v563_v0 }
 0x1ea   :  { %1864 = vmatpush.bf16.msrb.mxu0 %v2553_v34  ;;  %v628_v32 = vadd.f32 %v596_v19, %v562_v46 }
 0x1eb   :  { %1892 = vmatpush.bf16.msrb.mxu2 %v2567_v35 }
 0x1ec   :  { %1907 = vmatpush.bf16.msrb.mxu3 %v2573_v30  ;;  %v450_v29 = vpop.permute.xlu1 %449  ;;  %v2586_v30 = vld [vmem:[%s3688_s2] ss:$0 sm:$0xff] }
 0x1ed   :  { %1878 = vmatpush.bf16.msrb.mxu1 %v2560_v54  ;;  %v559_v5 = vpop.permute.xlu0 %558  ;;  %v461_v37 = vsel %vm457_vm3, %v3501_v40, %v450_v29  ;;  %v2563_v40 = vld [vmem:[%s3687_s1 + $0x380] sm:$0xff] }
 0x1ee   :  { %1865 = vmatpush.bf16.msrb.mxu0 %v2552_v23  ;;  %v561_v43 = vsel %vm560_vm2, %v557_v45, %v559_v5  ;;  %v576_v53 = vsel %vm560_vm2, %v559_v5, %v3360_v36  ;;  %v460_v36 = vsel %vm457_vm3, %v450_v29, %v452_v41  ;;  %v524_v20 = vadd.f32 %v492_v61, %v461_v37 }
 0x1ef   :  { %1893 = vmatpush.bf16.msrb.mxu2 %v2566_v51  ;;  %v630_v60 = vadd.f32 %v598_v18, %v576_v53  ;;  %v629_v24 = vadd.f32 %v597_v6, %v561_v43  ;;  %v525_v48 = vadd.f32 %v493_v50, %v460_v36 }
 0x1f0   :  { %1908 = vmatpush.bf16.msrb.mxu3 %v2572_v38  ;;  %v643_v11 = vmax.f32 %v524_v20, %v3058_v13 }
 0x1f1   :  { %1879 = vmatpush.bf16.msrb.mxu1 %v2559_v57  ;;  %v662_v26 = vmax.f32 %v646_v15, %v630_v60  ;;  %v661_v4 = vmax.f32 %v645_v28, %v629_v24  ;;  %v644_v7 = vmax.f32 %v525_v48, %v3060_v16  ;;  %v2547_v16 = vld [vmem:[%s3687_s1 + $0x300] sm:$0xff]  ;;  %s2618_s1 = smov [#allocation2]  }
 0x1f2   :  { %1866 = vmatpush.bf16.msrb.mxu0 %v2551_v33  ;;  %v659_v34 = vmax.f32 %v643_v11, %v627_v56  ;;  %s1921_s2 = sshll.u32 %s2618_s1, 4  ;;  %s1922_s2 = int_to_ptr.vmem [resolvable:$true] %s1921_s2 }
 0x1f3   :  { %1894 = vmatpush.bf16.msrb.mxu2 %v2565_v14  ;;  %v678_v3 = vpack.c.bf16 %v662_v26, %v662_v26  ;;  %v677_v59 = vpack.c.bf16 %v661_v4, %v661_v4  ;;  %v660_v47 = vmax.f32 %v644_v7, %v628_v32 }
 0x1f4   :  { %1909 = vmatpush.bf16.msrb.mxu3 %v2571_v25  ;;  %v675_v13 = vpack.c.bf16 %v659_v34, %v659_v34 }
 0x1f5   :  { %1880 = vmatpush.bf16.msrb.mxu1 %v2558_v12  ;;  %v676_v17 = vpack.c.bf16 %v660_v47, %v660_v47 }
 0x1f6   :  { %1867 = vmatpush.bf16.msrb.mxu0 %v2550_v9 }
 0x1f7   :  { %1895 = vmatpush.bf16.msrb.mxu2 %v2564_v27  ;;  %1910 = vmatmul.bf16.vlgmr.msrb.gmra.mxu3 %v678_v3 }
 0x1f9   :  { %1881 = vmatpush.bf16.msrb.mxu1 %v2557_v52 }
 0x1fa   :  { %1868 = vmatpush.bf16.msrb.mxu0 %v2549_v62 }
 0x1fb   :  { %1896 = vmatpush.bf16.msrb.mxu2 %v2563_v40 }
 0x1fd   :  { %1882 = vmatpush.bf16.msrb.mxu1 %v2556_v58 }
 0x1fe   :  { %1897 = vmatmul.bf16.vlgmr.msrb.gmra.mxu2 %v677_v59  ;;  %1869 = vmatpush.bf16.msrb.mxu0 %v2548_v10 }
 0x201   :  { %1883 = vmatpush.bf16.msrb.mxu1 %v2555_v42 }
 0x202   :  { %1870 = vmatpush.bf16.msrb.mxu0 %v2547_v16 }
 0x204   :  { %1884 = vmatmul.bf16.vlgmr.msrb.gmra.mxu1 %v676_v17 }
 0x205   :  { %1871 = vmatmul.bf16.vlgmr.msrb.gmra.mxu0 %v675_v13 }
 0x23a   :  { %v1755_v55 = vpop.f32.mrf.mxu3 }
 0x240   :  { %v1742_v8 = vpop.f32.mrf.mxu2 }
 0x241   :  { %v1729_v35 = vpop.f32.mrf.mxu1 }
 0x242   :  { %v1716_v21 = vpop.f32.mrf.mxu0  ;;  %v1757_v41 = vpop.f32.mrf.mxu3 }
 0x243   :  { %v1717_v31 = vadd.f32 %v2586_v30, %v1716_v21 }
 0x245   :  { %v1730_v33 = vadd.f32 %v1729_v35, %v1717_v31 }
 0x247   :  { %v1743_v38 = vadd.f32 %v1742_v8, %v1730_v33 }
 0x248   :  { %v1744_v54 = vpop.f32.mrf.mxu2 }
 0x249   :  { %v1731_v22 = vpop.f32.mrf.mxu1  ;;  %v1756_v29 = vadd.f32 %v1755_v55, %v1743_v38 }
 0x24a   :  { %v1718_v23 = vpop.f32.mrf.mxu0 }
 0x250   :  { %v1794_v2 = vpop.f32.mrf.mxu2 }
 0x251   :  { %v1807_v51 = vpop.f32.mrf.mxu3 }
 0x252   :  { %v1768_v45 = vpop.f32.mrf.mxu0 }
 0x253   :  { %v1781_v57 = vpop.f32.mrf.mxu1  ;;  %v1769_v43 = vadd.f32 %v1768_v45, %v1756_v29 }
 0x255   :  { %v1782_v12 = vadd.f32 %v1781_v57, %v1769_v43 }
 0x257   :  { %v1795_v60 = vadd.f32 %v1794_v2, %v1782_v12 }
 0x258   :  { %v1796_v63 = vpop.f32.mrf.mxu2 }
 0x259   :  { %v1809_v18 = vpop.f32.mrf.mxu3  ;;  %v1808_v61 = vadd.f32 %v1807_v51, %v1795_v60 }
 0x25a   :  { %v1770_v44 = vpop.f32.mrf.mxu0 }
 0x25b   :  { %v1783_v14 = vpop.f32.mrf.mxu1 }
 0x261   :  { %v1846_v6 = vpop.f32.mrf.mxu2 }
 0x263   :  { %v1833_v53 = vpop.f32.mrf.mxu1 }
 0x264   :  { %v1820_v5 = vpop.f32.mrf.mxu0 }
 0x265   :  { %v1821_v27 = vadd.f32 %v1820_v5, %v1808_v61 }
 0x267   :  { %v1834_v25 = vadd.f32 %v1833_v53, %v1821_v27 }
 0x268   :  { %v1859_v15 = vpop.f32.mrf.mxu3 }
 0x269   :  { %v1848_v49 = vpop.f32.mrf.mxu2  ;;  %v1847_v37 = vadd.f32 %v1846_v6, %v1834_v25 }
 0x26b   :  { %v1835_v9 = vpop.f32.mrf.mxu1  ;;  %v1860_v26 = vadd.f32 %v1859_v15, %v1847_v37 }
 0x26c   :  { %v1822_v50 = vpop.f32.mrf.mxu0 }
 0x270   :  { %v1861_v36 = vpop.f32.mrf.mxu3 }
 0x27a   :  { %v1911_v24 = vpop.f32.mrf.mxu3 }
 0x281   :  { %v1885_v52 = vpop.f32.mrf.mxu1  ;;  %v1898_v39 = vpop.f32.mrf.mxu2 }
 0x282   :  { %v1872_v28 = vpop.f32.mrf.mxu0  ;;  %v1913_v62 = vpop.f32.mrf.mxu3 }
 0x283   :  { %v1873_v48 = vadd.f32 %v1872_v28, %v1860_v26 }
 0x285   :  { %v1886_v3 = vadd.f32 %v1885_v52, %v1873_v48 }
 0x287   :  { %v1899_v20 = vadd.f32 %v1898_v39, %v1886_v3 }
 0x289   :  { %v1887_v40 = vpop.f32.mrf.mxu1  ;;  %v1900_v19 = vpop.f32.mrf.mxu2  ;;  %v1912_v4 = vadd.f32 %v1911_v24, %v1899_v20 }
 0x28a   :  { %v1874_v46 = vpop.f32.mrf.mxu0 }
 0x28b   :  { %1915 = vst [vmem:[#allocation2] sm:$0xff] %v1912_v4 }
 0x28c   :  { %1926 = dma.vmem_to_hbm [thread:$0]  %s1922_s2, 128, %s1924_s10, [#allocation3]  }
 0x28d   :  { %2611 = dma.done.wait [#allocation3], 128  }
 0x28e   :  { %2612 = vsyncadd [#allocation3], 4294967168 }
 0x28f   :  { %1931 = vsyncpa [#allocation3], 1 }

</bundles_post_ra>
